<compile_context>
chip_gen: v7x
topology: tpu7x:2x2x1
jax: 0.10.0
libtpu: 0.0.40
codegen_flags: <defaults>
</compile_context>

<pallas_src>
import functools

import jax
import jax.numpy as jnp
from jax.experimental import pallas as pl
from jax.experimental.pallas import tpu as pltpu

_LANES = 128


def _cdiv(a, b):
    return -(-a // b)


def _round_up(x, m):
    return ((x + m - 1) // m) * m


def _elu(x):
    # ELU(alpha=1): x if x > 0 else exp(x) - 1.  Clamp the exp argument so the
    # positive (untaken) branch never produces inf.
    return jnp.where(x > 0, x, jnp.exp(jnp.minimum(x, 0.0)) - 1.0)


def _mlp_kernel(x_ref, w1_ref, b1_ref, w2_ref, b2_ref, o_ref, *, activated):
    # MXU: bf16 operands, f32 accumulation.  Elementwise math stays f32.
    x = x_ref[...].astype(jnp.bfloat16)

    # hidden_1 (folded / block-diagonal): (tile, fold*C_in) @ (fold*C_in, fold*H)
    h = jnp.dot(x, w1_ref[...], preferred_element_type=jnp.float32) + b1_ref[...]
    h = _elu(h)

    # hidden_2: (tile, fold*H) @ (fold*H, fold*C_out)
    o = jnp.dot(h.astype(jnp.bfloat16), w2_ref[...],
                preferred_element_type=jnp.float32) + b2_ref[...]
    if activated:
        o = _elu(o)

    o_ref[...] = o.astype(o_ref.dtype)


def _choose_fold(c_in, c_out, max_fold=8):
    """Smallest row-fold factor making both folded I/O widths multiples of 128."""
    for f in range(1, max_fold + 1):
        if (f * c_in) % _LANES == 0 and (f * c_out) % _LANES == 0:
            return f
    return 1  # un-folded layout (still correct, just not lane-dense)


def prepare_mynn_params(w1, b1, w2, b2, *, fold):
    """Build kernel-side params ONCE (at module init), not per forward call.

    w1: (H, C_in)   PyTorch-layout weight of hidden_1
    b1: (H,)
    w2: (C_out, H)  PyTorch-layout weight of hidden_2
    b2: (C_out,)
    Returns block-diagonal, pre-transposed bf16 weights + f32 2-D tiled biases.
    """
    h, c_in = w1.shape
    c_out = w2.shape[0]
    assert w2.shape == (c_out, h)

    w1_t = jnp.transpose(w1).astype(jnp.bfloat16)  # (C_in, H)
    w2_t = jnp.transpose(w2).astype(jnp.bfloat16)  # (H, C_out)
    b1_f = b1.astype(jnp.float32)
    b2_f = b2.astype(jnp.float32)
    if fold == 1:
        return (w1_t, b1_f.reshape(1, h), w2_t, b2_f.reshape(1, c_out))

    eye = jnp.eye(fold, dtype=jnp.bfloat16)
    w1_bd = jnp.kron(eye, w1_t)                       # (fold*C_in, fold*H) block-diag
    w2_bd = jnp.kron(eye, w2_t)                       # (fold*H, fold*C_out) block-diag
    b1_bd = jnp.tile(b1_f, fold).reshape(1, fold * h)
    b2_bd = jnp.tile(b2_f, fold).reshape(1, fold * c_out)
    return (w1_bd, b1_bd, w2_bd, b2_bd)


def _select_tiling(b_fold, batch_tile):
    """Even batch split: minimal tail padding, and >= 2 grid steps for larger
    batches so ("parallel",) can shard across both v7x TensorCores."""
    min_tiles = 2 if b_fold > 256 else 1
    num_tiles = max(_cdiv(b_fold, batch_tile), min_tiles)
    if num_tiles == 1:
        return b_fold, 1               # one block == full array (no 8-row pad needed)
    tile = _round_up(_cdiv(b_fold, num_tiles), 8)
    num_tiles = max(_cdiv(b_fold, tile), min_tiles)
    return tile, num_tiles


def _vmem_limit_bytes(tile, cf_in, cf_h, cf_out, params, x_dtype, out_dtype):
    # 2x double-buffered x/out blocks + resident weights (count 2x to be safe)
    # + ~4 live (tile, max_width) f32 intermediates inside the body.
    w_bytes = sum(int(p.size) * p.dtype.itemsize for p in params)
    xbuf = 2 * tile * cf_in * jnp.dtype(x_dtype).itemsize
    obuf = 2 * tile * cf_out * jnp.dtype(out_dtype).itemsize
    live = 4 * tile * max(cf_in, cf_h, cf_out) * 4
    need = xbuf + obuf + 2 * w_bytes + live
    # 50% headroom, floor 32 MiB (above v5e's 16 MiB default scoped limit),
    # cap 48 MiB (headroom under v7x's 64 MiB physical VMEM).
    return int(min(max(1.5 * need, 32 * 1024 * 1024), 48 * 1024 * 1024))


def mynn_forward_prepared(x, params, *, c_out, fold, activated=True,
                          batch_tile=2048, out_dtype=None):
    """Pallas TPU forward of MyNN given prepared (block-diagonal) params.

    x: (B, C_in) float32 (bf16 also accepted; dots cast to bf16 internally).
    Returns (B, C_out) in out_dtype (defaults to x.dtype).
    """
    w1_bd, b1_bd, w2_bd, b2_bd = params
    B, c_in = x.shape
    cf_in = fold * c_in
    cf_h = w1_bd.shape[1]
    cf_out = fold * c_out
    assert w1_bd.shape[0] == cf_in and w2_bd.shape[1] == cf_out
    if out_dtype is None:
        out_dtype = x.dtype          # pass bf16 through here on v5e if the graph allows

    # --- fold `fold` rows into one lane-dense row; even batch split -------------
    b_fold = _cdiv(B, fold)
    tile, num_tiles = _select_tiling(b_fold, batch_tile)
    b_fold_pad = num_tiles * tile

    total_rows = b_fold_pad * fold
    if total_rows != B:
        # Single minimal pad (fold remainder + ragged tail tile only).
        x = jnp.pad(x, ((0, total_rows - B), (0, 0)))
    x_fold = x.reshape(b_fold_pad, cf_in)            # row-major reshape: free

    kernel = functools.partial(_mlp_kernel, activated=activated)
    vmem_limit = _vmem_limit_bytes(tile, cf_in, cf_h, cf_out,
                                   (w1_bd, b1_bd, w2_bd, b2_bd),
                                   x.dtype, out_dtype)

    out_fold = pl.pallas_call(
        kernel,
        out_shape=jax.ShapeDtypeStruct((b_fold_pad, cf_out), out_dtype),
        grid_spec=pltpu.PrefetchScalarGridSpec(
            num_scalar_prefetch=0,
            grid=(num_tiles,),
            in_specs=[
                # Only x varies per grid step.  If profiling shows exposed input
                # DMA at very large tiles, add pipeline_mode=pl.Buffered(3) here.
                pl.BlockSpec((tile, cf_in), lambda i: (i, 0)),
                pl.BlockSpec(w1_bd.shape, lambda i: (0, 0)),   # block-diag W1^T (resident)
                pl.BlockSpec(b1_bd.shape, lambda i: (0, 0)),
                pl.BlockSpec(w2_bd.shape, lambda i: (0, 0)),   # block-diag W2^T (resident)
                pl.BlockSpec(b2_bd.shape, lambda i: (0, 0)),
            ],
            out_specs=pl.BlockSpec((tile, cf_out), lambda i: (i, 0)),
        ),
        compiler_params=pltpu.CompilerParams(
            # batch axis is independent -> shards across both TensorCores on v7x
            dimension_semantics=("parallel",),
            vmem_limit_bytes=vmem_limit,
        ),
    )(x_fold, w1_bd, b1_bd, w2_bd, b2_bd)

    # Unfold back to (B, C_out); the slice is a no-op when no padding was added.
    out = out_fold.reshape(b_fold_pad * fold, c_out)[:B]
    return out


def _init_linear_params(key, out_features, in_features):
    # Deterministic init mirroring torch.nn.Linear (uniform in +/- 1/sqrt(fan_in)).
    kw, kb = jax.random.split(key)
    bound = 1.0 / jnp.sqrt(jnp.float32(in_features))
    w = jax.random.uniform(kw, (out_features, in_features), jnp.float32,
                           minval=-bound, maxval=bound)
    b = jax.random.uniform(kb, (out_features,), jnp.float32,
                           minval=-bound, maxval=bound)
    return w, b


def _ref_mynn(x, w1, b1, w2, b2, activated):
    def elu(v):
        return jnp.where(v > 0, v, jnp.exp(jnp.minimum(v, 0.0)) - 1.0)
    o = elu(x @ w1.T + b1)
    o = o @ w2.T + b2
    if activated:
        o = elu(o)
    return o


if __name__ == "__main__":
    # MyNN config (small shapes): in_channels=32, hidden_gain=2 -> hidden=64,
    # out_channels defaults to in_channels, activated=True.
    in_channels = 32
    hidden_gain = 2
    out_channels = in_channels
    activated = True

    key = jax.random.PRNGKey(0)
    kx, k1, k2 = jax.random.split(key, 3)

    w1, b1 = _init_linear_params(k1, in_channels * hidden_gain, in_channels)
    w2, b2 = _init_linear_params(k2, out_channels, in_channels * hidden_gain)

    fold = _choose_fold(in_channels, out_channels)           # -> 4 (32 -> 128 lanes)
    params = prepare_mynn_params(w1, b1, w2, b2, fold=fold)  # built once, reused

    ok = True
    # (batch, batch_tile): aligned single tile; ragged fold pad; multi-tile grid
    # with even-split tiling + small tail pad.
    for batch, tile in [(8, 2048), (6, 2048), (300, 64)]:
        x = jax.random.normal(jax.random.fold_in(kx, batch),
                              (batch, in_channels), dtype=jnp.float32)
        out = mynn_forward_prepared(x, params, c_out=out_channels, fold=fold,
                                    activated=activated, batch_tile=tile)
        out = jax.block_until_ready(out)
        ref = _ref_mynn(x, w1, b1, w2, b2, activated)
        ok = ok and (out.shape == (batch, out_channels))
        # bf16 MXU operands (f32 accumulation / bias / ELU) -> relaxed tolerance
        # versus the pure-f32 reference.
        ok = ok and bool(jnp.allclose(out, ref, atol=5e-2, rtol=5e-2))

    if ok:
        print("KERNEL_OK")
    else:
        print("MISMATCH")
</pallas_src>

<mosaic_0001>
module attributes {stable_mosaic.version = 11 : i64} {
  func.func @_mlp_kernel(%arg0: i32, %arg1: memref<2x128xf32, #tpu.memory_space<vmem>>, %arg2: memref<128x256xbf16, #tpu.memory_space<vmem>>, %arg3: memref<1x256xf32, #tpu.memory_space<vmem>>, %arg4: memref<256x128xbf16, #tpu.memory_space<vmem>>, %arg5: memref<1x128xf32, #tpu.memory_space<vmem>>, %arg6: memref<2x128xf32, #tpu.memory_space<vmem>>) attributes {dimension_semantics = [#tpu.dimension_semantics<parallel>], iteration_bounds = array<i64: 1>, scalar_prefetch = 0 : i64, scratch_operands = 0 : i64, tpu.core_type = #tpu.core_type<tc>, window_params = [{transform_indices = @transform_0, window_bounds = array<i64: 2, 128>}, {pipeline_mode = #tpu.pipeline_mode<synchronous>, transform_indices = @transform_1, window_bounds = array<i64: 128, 256>}, {pipeline_mode = #tpu.pipeline_mode<synchronous>, transform_indices = @transform_2, window_bounds = array<i64: 1, 256>}, {pipeline_mode = #tpu.pipeline_mode<synchronous>, transform_indices = @transform_3, window_bounds = array<i64: 256, 128>}, {pipeline_mode = #tpu.pipeline_mode<synchronous>, transform_indices = @transform_4, window_bounds = array<i64: 1, 128>}, {transform_indices = @transform_5, window_bounds = array<i64: 2, 128>}]} {
    %c0 = arith.constant 0 : index
    %c0_0 = arith.constant 0 : index
    %0 = vector.load %arg1[%c0, %c0_0] : memref<2x128xf32, #tpu.memory_space<vmem>>, vector<2x128xf32>
    %1 = arith.truncf %0 : vector<2x128xf32> to vector<2x128xbf16>
    %c0_1 = arith.constant 0 : index
    %c0_2 = arith.constant 0 : index
    %2 = vector.load %arg2[%c0_1, %c0_2] : memref<128x256xbf16, #tpu.memory_space<vmem>>, vector<128x256xbf16>
    %cst = arith.constant dense<0.000000e+00> : vector<2x256xf32>
    %3 = tpu.matmul %1, %2, %cst {dimension_numbers = #tpu.dot_dimension_numbers<[1], [0], [0], [1], [0, 0, 1, 1], [], []>} : vector<2x128xbf16>, vector<128x256xbf16>, vector<2x256xf32> -> vector<2x256xf32>
    %c0_3 = arith.constant 0 : index
    %c0_4 = arith.constant 0 : index
    %4 = vector.load %arg3[%c0_3, %c0_4] : memref<1x256xf32, #tpu.memory_space<vmem>>, vector<1x256xf32>
    %5 = vector.broadcast %4 : vector<1x256xf32> to vector<2x256xf32>
    %6 = arith.addf %3, %5 : vector<2x256xf32>
    %cst_5 = arith.constant 0.000000e+00 : f32
    %7 = vector.broadcast %cst_5 : f32 to vector<2x256xf32>
    %8 = arith.cmpf ogt, %6, %7 : vector<2x256xf32>
    %cst_6 = arith.constant 0.000000e+00 : f32
    %9 = vector.broadcast %cst_6 : f32 to vector<2x256xf32>
    %10 = arith.minimumf %6, %9 : vector<2x256xf32>
    %11 = math.exp %10 : vector<2x256xf32>
    %cst_7 = arith.constant 1.000000e+00 : f32
    %12 = vector.broadcast %cst_7 : f32 to vector<2x256xf32>
    %13 = arith.subf %11, %12 : vector<2x256xf32>
    %14 = arith.select %8, %6, %13 : vector<2x256xi1>, vector<2x256xf32>
    %15 = arith.truncf %14 : vector<2x256xf32> to vector<2x256xbf16>
    %c0_8 = arith.constant 0 : index
    %c0_9 = arith.constant 0 : index
    %16 = vector.load %arg4[%c0_8, %c0_9] : memref<256x128xbf16, #tpu.memory_space<vmem>>, vector<256x128xbf16>
    %cst_10 = arith.constant dense<0.000000e+00> : vector<2x128xf32>
    %17 = tpu.matmul %15, %16, %cst_10 {dimension_numbers = #tpu.dot_dimension_numbers<[1], [0], [0], [1], [0, 0, 1, 1], [], []>} : vector<2x256xbf16>, vector<256x128xbf16>, vector<2x128xf32> -> vector<2x128xf32>
    %c0_11 = arith.constant 0 : index
    %c0_12 = arith.constant 0 : index
    %18 = vector.load %arg5[%c0_11, %c0_12] : memref<1x128xf32, #tpu.memory_space<vmem>>, vector<1x128xf32>
    %19 = vector.broadcast %18 : vector<1x128xf32> to vector<2x128xf32>
    %20 = arith.addf %17, %19 : vector<2x128xf32>
    %cst_13 = arith.constant 0.000000e+00 : f32
    %21 = vector.broadcast %cst_13 : f32 to vector<2x128xf32>
    %22 = arith.cmpf ogt, %20, %21 : vector<2x128xf32>
    %cst_14 = arith.constant 0.000000e+00 : f32
    %23 = vector.broadcast %cst_14 : f32 to vector<2x128xf32>
    %24 = arith.minimumf %20, %23 : vector<2x128xf32>
    %25 = math.exp %24 : vector<2x128xf32>
    %cst_15 = arith.constant 1.000000e+00 : f32
    %26 = vector.broadcast %cst_15 : f32 to vector<2x128xf32>
    %27 = arith.subf %25, %26 : vector<2x128xf32>
    %28 = arith.select %22, %20, %27 : vector<2x128xi1>, vector<2x128xf32>
    %c0_16 = arith.constant 0 : index
    %c0_17 = arith.constant 0 : index
    %29 = vector.load %arg6[%c0_16, %c0_17] : memref<2x128xf32, #tpu.memory_space<vmem>>, vector<2x128xf32>
    tpu.vector_store %arg6[%c0_16, %c0_17], %28 {strides = array<i32>} : memref<2x128xf32, #tpu.memory_space<vmem>>, vector<2x128xf32>,
    return
  }
  func.func @transform_0(%arg0: i32) -> (i32, i32) {
    %c0_i32 = arith.constant 0 : i32
    %c0_i32_0 = arith.constant 0 : i32
    return %arg0, %c0_i32 : i32, i32
  }
  func.func @transform_1(%arg0: i32) -> (i32, i32) {
    %c0_i32 = arith.constant 0 : i32
    %c0_i32_0 = arith.constant 0 : i32
    %c0_i32_1 = arith.constant 0 : i32
    return %c0_i32, %c0_i32_0 : i32, i32
  }
  func.func @transform_2(%arg0: i32) -> (i32, i32) {
    %c0_i32 = arith.constant 0 : i32
    %c0_i32_0 = arith.constant 0 : i32
    %c0_i32_1 = arith.constant 0 : i32
    return %c0_i32, %c0_i32_0 : i32, i32
  }
  func.func @transform_3(%arg0: i32) -> (i32, i32) {
    %c0_i32 = arith.constant 0 : i32
    %c0_i32_0 = arith.constant 0 : i32
    %c0_i32_1 = arith.constant 0 : i32
    return %c0_i32, %c0_i32_0 : i32, i32
  }
  func.func @transform_4(%arg0: i32) -> (i32, i32) {
    %c0_i32 = arith.constant 0 : i32
    %c0_i32_0 = arith.constant 0 : i32
    %c0_i32_1 = arith.constant 0 : i32
    return %c0_i32, %c0_i32_0 : i32, i32
  }
  func.func @transform_5(%arg0: i32) -> (i32, i32) {
    %c0_i32 = arith.constant 0 : i32
    %c0_i32_0 = arith.constant 0 : i32
    return %arg0, %c0_i32 : i32, i32
  }
}

</mosaic_0001>

<bundles_post_ra>
// kernel: tpu_custom_call.1
= control target key start
LH: loop header
LB: loop body
LE: loop exit
PB: predicated region body
PF: predicated region fallthrough
CT: control target
= control target key end

     0   :  { %10 = vsyncpa [#allocation3], 0  ;;  %s724_s0 = inlined_call_operand.hbm [shape: f32[2,128], index: 0, kind: input, shape index: {}]   ;;  %s725_s1 = inlined_call_operand.hbm [shape: bf16[128,256], index: 1, kind: input, shape index: {}]   ;;  %s726_s2 = inlined_call_operand.vmem [shape: f32[1,256], index: 2, kind: input, shape index: {}]   ;;  %s727_s3 = inlined_call_operand.hbm [shape: bf16[256,128], index: 3, kind: input, shape index: {}]   ;;  %s728_s4 = inlined_call_operand.vmem [shape: f32[1,128], index: 4, kind: input, shape index: {}]   ;;  %s729_s5 = inlined_call_operand.hbm [shape: f32[2,128], index: 5, kind: output, shape index: {}]  }
   0x1   :  { %11 = vsyncpa [#allocation6], 0 }
   0x2   :  { %12 = vsyncpa [#allocation4], 0  ;;  %s631_s18 = smov [#allocation5]   ;;  %s537_s22 = scalar_lea.hbm %s725_s1, 2048 }
   0x3   :  { %s28_s19 = sshll.u32 %s631_s18, 4  ;;  %p538_p0 = scmp.ne.s32.totalorder %s725_s1, %s537_s22  ;;  %s29_s19 = int_to_ptr.vmem [resolvable:$true] %s28_s19 }
   0x4   :  { %p541_p1 = scmp.lt.u32.totalorder %s537_s22, %s725_s1 }
   0x6   :  { %p543_p2 = pnand %p541_p1, %p538_p0 }
   0x8   :  { %546 = shalt.err (!%p543_p2)
}
   0x9   :  { %s547_s27 = scalar_lea.vmem %s29_s19, 2048  ;;  %p552_p4 = scmp.lt.s32.totalorder %s29_s19, %s29_s19 }
   0xa   :  { %p548_p3 = scmp.ne.s32.totalorder %s29_s19, %s547_s27  ;;  %p553_p5 = scmp.lt.s32.totalorder %s547_s27, %s547_s27 }
   0xc   :  { %p554_p6 = por %p553_p5, %p552_p4 }
   0xe   :  { %p555_p7 = pnand %p554_p6, %p548_p3 }
  0x10   :  { %558 = shalt.err (!%p555_p7)
}
  0x11   :  { %s632_s28 = smov 128   ;;  %s633_s29 = smov 8  }
  0x12   :  { %34 = dma.hbm_to_vmem [thread:$0]  %s725_s1, 2048, %s29_s19, [#allocation6], %s632_s28, %s632_s28, %s633_s29  }
  0x13   :  { %s634_s7 = smov [#allocation2]   ;;  %s635_s9 = smov [#allocation7]  }
  0x14   :  { %s19_s8 = sshll.u32 %s634_s7, 4  ;;  %s42_s10 = sshll.u32 %s635_s9, 4  ;;  %s20_s8 = int_to_ptr.vmem [resolvable:$true] %s19_s8  ;;  %s43_s10 = int_to_ptr.vmem [resolvable:$true] %s42_s10 }
  0x15   :  { %s559_s13 = scalar_lea.hbm %s724_s0, 32 }
  0x16   :  { %p560_p8 = scmp.ne.s32.totalorder %s724_s0, %s559_s13  ;;  %p563_p9 = scmp.lt.u32.totalorder %s559_s13, %s724_s0 }
  0x18   :  { %p565_p10 = pnand %p563_p9, %p560_p8 }
  0x1a   :  { %568 = shalt.err (!%p565_p10)
}
  0x1b   :  { %s569_s1 = scalar_lea.vmem %s20_s8, 32  ;;  %p574_p12 = scmp.lt.s32.totalorder %s20_s8, %s20_s8 }
  0x1c   :  { %p570_p11 = scmp.ne.s32.totalorder %s20_s8, %s569_s1  ;;  %p575_p13 = scmp.lt.s32.totalorder %s569_s1, %s569_s1 }
  0x1e   :  { %p576_p0 = por %p575_p13, %p574_p12 }
  0x20   :  { %p577_p1 = pnand %p576_p0, %p570_p11 }
  0x22   :  { %580 = shalt.err (!%p577_p1)
}
  0x23   :  { %22 = dma.hbm_to_vmem [thread:$0]  %s724_s0, 32, %s20_s8, [#allocation3]  }
  0x24   :  { %s581_s22 = scalar_lea.hbm %s727_s3, 2048 }
  0x25   :  { %p582_p2 = scmp.ne.s32.totalorder %s727_s3, %s581_s22  ;;  %p585_p3 = scmp.lt.u32.totalorder %s581_s22, %s727_s3 }
  0x27   :  { %p587_p4 = pnand %p585_p3, %p582_p2 }
  0x29   :  { %590 = shalt.err (!%p587_p4)
}
  0x2a   :  { %s591_s27 = scalar_lea.vmem %s43_s10, 2048  ;;  %p596_p6 = scmp.lt.s32.totalorder %s43_s10, %s43_s10 }
  0x2b   :  { %p592_p5 = scmp.ne.s32.totalorder %s43_s10, %s591_s27  ;;  %p597_p7 = scmp.lt.s32.totalorder %s591_s27, %s591_s27 }
  0x2d   :  { %p598_p8 = por %p597_p7, %p596_p6 }
  0x2f   :  { %p599_p9 = pnand %p598_p8, %p592_p5 }
  0x31   :  { %602 = shalt.err (!%p599_p9)
}
  0x32   :  { %s636_s0 = smov 64   ;;  %s637_s28 = smov 4  }
  0x33   :  { %48 = dma.hbm_to_vmem [thread:$0]  %s727_s3, 2048, %s43_s10, [#allocation6], %s636_s0, %s636_s0, %s637_s28  }
  0x34   :  { %625 = dma.done.wait [#allocation3], 32  }
  0x35   :  { %626 = vsyncadd [#allocation3], 4294967264 }
  0x36   :  { %627 = dma.done.wait [#allocation6], 4096  }
  0x37   :  { %628 = vsyncadd [#allocation6], 4294963200  ;;  %v638_v0 = vmov 0   ;;  %v491_v1 = vld [vmem:[#allocation5 + $0x4] ss:$8 sps:$4 sm:$0xff]   ;;  %v519_v23 = vld [vmem:[#allocation7 + $0x50] sm:$0xff]   ;;  %v81_v35 = vlaneseq }
  0x38   :  { %203 = vmatprep.mubr.bf16.mxu0 %v638_v0  ;;  %v493_v2 = vld [vmem:[#allocation5] ss:$8 sps:$4 sm:$0xff]   ;;  %171 = vmatprep.subr.bf16.mxu0 %v491_v1  ;;  %v494_v3 = vld [vmem:[#allocation5 + $0x14] ss:$8 sps:$4 sm:$0xff]   ;;  %v496_v4 = vld [vmem:[#allocation5 + $0x10] ss:$8 sps:$4 sm:$0xff]  }
  0x39   :  { %172 = vmatpush1.bf16.msra.mxu0 %v493_v2  ;;  %v497_v5 = vld [vmem:[#allocation5 + $0x24] ss:$8 sps:$4 sm:$0xff]   ;;  %v499_v6 = vld [vmem:[#allocation5 + $0x20] ss:$8 sps:$4 sm:$0xff]   ;;  %v500_v7 = vld [vmem:[#allocation5 + $0x34] ss:$8 sps:$4 sm:$0xff]  }
  0x3a   :  { %173 = vmatprep.subr.bf16.mxu0 %v494_v3  ;;  %v502_v8 = vld [vmem:[#allocation5 + $0x30] ss:$8 sps:$4 sm:$0xff]   ;;  %v503_v9 = vld [vmem:[#allocation5 + $0x44] ss:$8 sps:$4 sm:$0xff]   ;;  %v505_v12 = vld [vmem:[#allocation5 + $0x40] ss:$8 sps:$4 sm:$0xff]  }
  0x3b   :  { %v515_v10 = vld [vmem:[#allocation7 + $0x40] sm:$0xff]   ;;  %v517_v13 = vld [vmem:[#allocation7 + $0x48] sm:$0xff]   ;;  %v506_v15 = vld [vmem:[#allocation5 + $0x54] ss:$8 sps:$4 sm:$0xff]   ;;  %v82_v36 = vshrl.u32 %v81_v35, 7  ;;  %s639_s8 = smov [#allocation8]  }
  0x3c   :  { %v516_v11 = vld [vmem:[#allocation7] sm:$0xff]   ;;  %460 = vmatprep.subr.bf16.mxu1 %v515_v10  ;;  %v518_v14 = vld [vmem:[#allocation7 + $0x8] sm:$0xff]   ;;  %v508_v16 = vld [vmem:[#allocation5 + $0x50] ss:$8 sps:$4 sm:$0xff]   ;;  %s414_s9 = sshll.u32 %s639_s8, 4  ;;  %s415_s9 = int_to_ptr.vmem [resolvable:$true] %s414_s9 }
  0x3d   :  { %174 = vmatpush1.bf16.msra.mxu0 %v496_v4  ;;  %461 = vmatpush3.bf16.msra.mxu1 %v516_v11  ;;  %v509_v17 = vld [vmem:[#allocation5 + $0x64] ss:$8 sps:$4 sm:$0xff]   ;;  %v511_v18 = vld [vmem:[#allocation5 + $0x60] ss:$8 sps:$4 sm:$0xff]   ;;  %v512_v19 = vld [vmem:[#allocation5 + $0x74] ss:$8 sps:$4 sm:$0xff]   ;;  %p608_p11 = scmp.lt.s32.totalorder %s415_s9, %s415_s9 }
  0x3e   :  { %175 = vmatprep.subr.bf16.mxu0 %v497_v5  ;;  %462 = vmatprep.subr.bf16.mxu1 %v517_v13  ;;  %v514_v20 = vld [vmem:[#allocation5 + $0x70] ss:$8 sps:$4 sm:$0xff]   ;;  %v61_v21 = vld [vmem:[#allocation2] sm:$0x3]  ;;  %v523_v27 = vld [vmem:[#allocation7 + $0x60] sm:$0xff]   ;;  %v83_v37 = vsub.s32 0, %v82_v36 }
  0x3f   :  { %v62_v22 = vpack.c.bf16 %v61_v21, %v61_v21  ;;  %v520_v24 = vld [vmem:[#allocation7 + $0x10] sm:$0xff]   ;;  %v521_v25 = vld [vmem:[#allocation7 + $0x58] sm:$0xff]   ;;  %v524_v28 = vld [vmem:[#allocation7 + $0x20] sm:$0xff]   ;;  %v87_v39 = vsub.s32 1, %v82_v36  ;;  %s603_s10 = scalar_lea.vmem %s415_s9, 32 }
  0x40   :  { %v522_v26 = vld [vmem:[#allocation7 + $0x18] sm:$0xff]   ;;  %v525_v29 = vld [vmem:[#allocation7 + $0x68] sm:$0xff]   ;;  %v527_v31 = vld [vmem:[#allocation7 + $0x70] sm:$0xff]   ;;  %p604_p10 = scmp.ne.s32.totalorder %s415_s9, %s603_s10  ;;  %p609_p12 = scmp.lt.s32.totalorder %s603_s10, %s603_s10 }
  0x41   :  { %176 = vmatpush1.bf16.msra.mxu0 %v499_v6  ;;  %463 = vmatpush3.bf16.msra.mxu1 %v518_v14  ;;  %v526_v30 = vld [vmem:[#allocation7 + $0x28] sm:$0xff]   ;;  %v528_v32 = vld [vmem:[#allocation7 + $0x30] sm:$0xff]   ;;  %v529_v33 = vld [vmem:[#allocation7 + $0x78] sm:$0xff]  }
  0x42   :  { %177 = vmatprep.subr.bf16.mxu0 %v500_v7  ;;  %464 = vmatprep.subr.bf16.mxu1 %v519_v23  ;;  %v530_v34 = vld [vmem:[#allocation7 + $0x38] sm:$0xff]   ;;  %p610_p13 = por %p609_p12, %p608_p11 }
  0x43   :  { %v79_v38 = vld [vmem:[%s726_s2] sm:$0x3] }
  0x44   :  { %v84_v40 = vrot.slane %v79_v38, %v83_v37  ;;  %v88_v41 = vrot.slane %v79_v38, %v87_v39  ;;  %v442_v61 = vld [vmem:[%s728_s4] ss:$0 sm:$0xff]  ;;  %p611_p0 = pnand %p610_p13, %p604_p10 }
  0x45   :  { %178 = vmatpush1.bf16.msra.mxu0 %v502_v8  ;;  %465 = vmatpush3.bf16.msra.mxu1 %v520_v24 }
  0x46   :  { %179 = vmatprep.subr.bf16.mxu0 %v503_v9  ;;  %466 = vmatprep.subr.bf16.mxu1 %v521_v25 }
  0x49   :  { %180 = vmatpush1.bf16.msra.mxu0 %v505_v12  ;;  %467 = vmatpush3.bf16.msra.mxu1 %v522_v26 }
  0x4a   :  { %181 = vmatprep.subr.bf16.mxu0 %v506_v15  ;;  %468 = vmatprep.subr.bf16.mxu1 %v523_v27 }
  0x4d   :  { %182 = vmatpush1.bf16.msra.mxu0 %v508_v16  ;;  %469 = vmatpush3.bf16.msra.mxu1 %v524_v28 }
  0x4e   :  { %183 = vmatprep.subr.bf16.mxu0 %v509_v17  ;;  %470 = vmatprep.subr.bf16.mxu1 %v525_v29 }
  0x51   :  { %184 = vmatpush1.bf16.msra.mxu0 %v511_v18  ;;  %471 = vmatpush3.bf16.msra.mxu1 %v526_v30 }
  0x52   :  { %185 = vmatprep.subr.bf16.mxu0 %v512_v19  ;;  %472 = vmatprep.subr.bf16.mxu1 %v527_v31 }
  0x55   :  { %186 = vmatpush1.bf16.msra.mxu0 %v514_v20  ;;  %473 = vmatpush3.bf16.msra.mxu1 %v528_v32 }
  0x56   :  { %474 = vmatprep.subr.bf16.mxu1 %v529_v33 }
  0x58   :  { %204 = vmatmul.mubr.bf16.vlgmr.msra.gmra.mrb[0].mxu0 %v62_v22 }
  0x59   :  { %475 = vmatpush3.bf16.msra.mxu1 %v530_v34 }
 0x12b   :  { %v205_v42 = vpop.f32.mrb[0].mxu0 }
 0x12c   :  { %v206_v43 = vadd.f32 %v205_v42, %v84_v40  ;;  %v207_v44 = vpop.f32.mrb[1].mxu0 }
 0x12d   :  { %v208_v45 = vadd.f32 %v207_v44, %v88_v41  ;;  %v209_v46 = vpop.f32.mrb[2].mxu0 }
 0x12e   :  { %v214_v47 = vmin.f32 %v206_v43, 0.0  ;;  %v210_v48 = vpop.f32.mrb[3].mxu0  ;;  %vm212_vm0 = vcmp.gt.f32.partialorder %v206_v43, 0.0 }
 0x12f   :  { %v215_v49 = vmin.f32 %v208_v45, 0.0  ;;  %vm213_vm1 = vcmp.gt.f32.partialorder %v208_v45, 0.0 }
 0x130   :  { %v216_v50 = vmul.f32 1.442695, %v214_v47 }
 0x131   :  { %v218_v51 = vmul.f32 1.442695, %v215_v49 }
 0x132   :  { %531 = vpow2.f32 %v216_v50 }
 0x133   :  { %533 = vpow2.f32 %v218_v51 }
 0x13c   :  { %v532_v52 = vpop.eup %531 }
 0x13d   :  { %v534_v53 = vpop.eup %533  ;;  %v440_v54 = vadd.f32 -1.0, %v532_v52 }
 0x13e   :  { %v441_v55 = vadd.f32 -1.0, %v534_v53 }
 0x13f   :  { %v222_v56 = vsel %vm212_vm0, %v206_v43, %v440_v54 }
 0x140   :  { %v223_v57 = vsel %vm213_vm1, %v208_v45, %v441_v55  ;;  %v224_v59 = vpack.c.bf16 %v222_v56, %v222_v56 }
 0x141   :  { %v225_v58 = vpack.c.bf16 %v223_v57, %v223_v57 }
 0x143   :  { %393 = vmatprep.mubr.bf16.mxu1 %v225_v58 }
 0x144   :  { %394 = vmatmul.mubr.bf16.vlgmr.msra.gmra.mrb[0].mxu1 %v224_v59 }
 0x217   :  { %v476_v60 = vpop.f32.mrb[0].mxu1 }
 0x218   :  { %v477_v62 = vpop.f32.mrb[1].mxu1 }
 0x219   :  { %v478_v63 = vadd.f32 %v477_v62, %v476_v60  ;;  %v479_v0 = vpop.f32.mrb[2].mxu1 }
 0x21a   :  { %v480_v1 = vpop.f32.mrb[3].mxu1 }
 0x21b   :  { %v396_v2 = vadd.f32 %v478_v63, %v442_v61 }
 0x21d   :  { %v402_v3 = vmin.f32 %v396_v2, 0.0  ;;  %vm401_vm2 = vcmp.gt.f32.partialorder %v396_v2, 0.0 }
 0x21f   :  { %v403_v4 = vmul.f32 1.442695, %v402_v3 }
 0x221   :  { %535 = vpow2.f32 %v403_v4 }
 0x22b   :  { %v536_v5 = vpop.eup %535 }
 0x22c   :  { %v459_v6 = vadd.f32 -1.0, %v536_v5 }
 0x22e   :  { %v406_v7 = vsel %vm401_vm2, %v396_v2, %v459_v6 }
 0x22f   :  { %407 = vst [vmem:[#allocation8] sm:$0x3] %v406_v7 }
 0x230   :  { %614 = shalt.err (!%p611_p0)
}
 0x231   :  { %s615_s12 = scalar_lea.hbm %s729_s5, 32 }
 0x232   :  { %p616_p1 = scmp.ne.s32.totalorder %s729_s5, %s615_s12  ;;  %p619_p2 = scmp.lt.u32.totalorder %s615_s12, %s729_s5 }
 0x234   :  { %p621_p3 = pnand %p619_p2, %p616_p1 }
 0x236   :  { %624 = shalt.err (!%p621_p3)
}
 0x237   :  { %417 = dma.vmem_to_hbm [thread:$0]  %s415_s9, 32, %s729_s5, [#allocation4]  }
 0x238   :  { %629 = dma.done.wait [#allocation4], 32  }
 0x239   :  { %630 = vsyncadd [#allocation4], 4294967264 }
 0x23a   :  { %421 = vsyncpa [#allocation3], 1 }
 0x23b   :  { %422 = vsyncpa [#allocation6], 1 }
 0x23c   :  { %423 = vsyncpa [#allocation4], 1 }

</bundles_post_ra>
